<compile_context>
chip_gen: v7x
topology: tpu7x:2x2x1
jax: 0.10.0
libtpu: 0.0.40
codegen_flags: <defaults>
</compile_context>

<pallas_src>
import functools

import jax
import jax.numpy as jnp
from jax.experimental import pallas as pl
from jax.experimental.pallas import tpu as pltpu


def _dcn_kernel(x0_ref, wt_ref, b_ref, o_ref, *, compute_dtype):
    """x0_ref: (TB, F); wt_ref: (L, F, F) holding W^T per layer; b_ref: (L, 1, F)."""
    x0 = x0_ref[...].astype(jnp.float32)                     # (TB, F)
    cur = x0                                                 # current_embs = embs
    for l in range(wt_ref.shape[0]):                         # L is small & static: unroll
        # feature_crossing = W @ cur + b (column form) == cur @ W^T + b (row form)
        cross = jnp.dot(cur.astype(compute_dtype), wt_ref[l],
                        preferred_element_type=jnp.float32) + b_ref[l]
        cur = x0 * cross + cur                               # f32 epilogue
    o_ref[...] = cur.astype(o_ref.dtype)


def _choose_batch_tile(batch, requested):
    bt = max(8, min(requested, batch))
    bt -= bt % 8
    # Keep >= 2 batch tiles when the batch allows it (v7x has 2 TensorCores).
    if batch > 8 and -(-batch // bt) < 2:
        bt = max(8, ((batch // 2 + 7) // 8) * 8)
    return bt


@functools.partial(jax.jit, static_argnames=("batch_tile", "compute_dtype"))
def dcn_v2_cross_network(embs, weights, biases, *, batch_tile=256,
                         compute_dtype=jnp.bfloat16):
    """embs: (B, F); weights: (L, F, F); biases: (L, F, 1).  Returns (B, F)."""
    B, F = embs.shape
    L = weights.shape[0]

    bt = _choose_batch_tile(B, batch_tile)
    Bp = ((B + bt - 1) // bt) * bt
    Fp = ((F + 127) // 128) * 128

    # Glue: pad to (8,128)-friendly shapes, pre-transpose W, lay biases lane-dense.
    embs_p = jnp.pad(embs, ((0, Bp - B), (0, Fp - F)))
    w_p = jnp.pad(weights, ((0, 0), (0, Fp - F), (0, Fp - F)))
    b_p = jnp.pad(biases, ((0, 0), (0, Fp - F), (0, 0)))
    wt = jnp.swapaxes(w_p, 1, 2).astype(compute_dtype)        # (L, Fp, Fp) = W^T
    b_row = jnp.reshape(b_p, (L, 1, Fp)).astype(jnp.float32)  # (L, 1, Fp)

    # VMEM budget: resident weights/biases + double-buffered in/out tiles (+ margin),
    # capped at 64 MiB so the same tiling stays legal on v7x.
    w_bytes = L * Fp * Fp * jnp.dtype(compute_dtype).itemsize
    b_bytes = L * Fp * 4
    io_bytes = 2 * 2 * bt * Fp * embs.dtype.itemsize
    est = 2 * (w_bytes + b_bytes) + 2 * io_bytes + (1 << 20)
    vmem_limit = int(min(max(est, 16 << 20), 64 << 20))

    grid = (Bp // bt,)
    out = pl.pallas_call(
        functools.partial(_dcn_kernel, compute_dtype=compute_dtype),
        out_shape=jax.ShapeDtypeStruct((Bp, Fp), embs.dtype),
        grid_spec=pltpu.PrefetchScalarGridSpec(
            num_scalar_prefetch=0,
            grid=grid,
            in_specs=[
                pl.BlockSpec((bt, Fp), lambda i: (i, 0)),        # embs_0 batch tile
                pl.BlockSpec((L, Fp, Fp), lambda i: (0, 0, 0)),  # all W^T, VMEM-resident
                pl.BlockSpec((L, 1, Fp), lambda i: (0, 0, 0)),   # all biases, resident
            ],
            out_specs=pl.BlockSpec((bt, Fp), lambda i: (i, 0)),
        ),
        compiler_params=pltpu.CompilerParams(
            dimension_semantics=("parallel",),
            vmem_limit_bytes=vmem_limit,
        ),
    )(embs_p, wt, b_row)
    return out[:B, :F]


def dcn_v2_cross_network_ref(embs, weights, biases):
    """Pure-JAX reference matching the PyTorch forward exactly."""
    x0 = embs[:, :, None]                                    # (B, F, 1)
    cur = embs[:, :, None]
    for l in range(weights.shape[0]):
        crossing = weights[l] @ cur + biases[l]              # (F,F) @ (B,F,1) + (F,1)
        cur = x0 * crossing + cur
    return cur[:, :, 0]


if __name__ == "__main__":
    B, F, L = 32, 128, 3

    key = jax.random.PRNGKey(0)
    k_emb, k_w, k_b = jax.random.split(key, 3)

    # torch.rand -> uniform [0, 1)
    embs = jax.random.uniform(k_emb, (B, F), dtype=jnp.float32)
    weights = jax.random.uniform(k_w, (L, F, F), dtype=jnp.float32)
    biases = jax.random.uniform(k_b, (L, F, 1), dtype=jnp.float32)

    ref = dcn_v2_cross_network_ref(embs, weights, biases)

    # f32-MXU path: tight check against the torch-style reference.
    out_f32 = jax.block_until_ready(
        dcn_v2_cross_network(embs, weights, biases, compute_dtype=jnp.float32))
    assert out_f32.shape == (B, F)
    assert jnp.allclose(out_f32, ref, rtol=1e-4, atol=1e-4), "f32 path mismatch"

    # Default bf16-MXU path (f32 accumulation + f32 epilogue): bf16-level check.
    out = jax.block_until_ready(dcn_v2_cross_network(embs, weights, biases))
    assert out.shape == (B, F)
    rel_err = jnp.max(jnp.abs(out - ref) / (jnp.abs(ref) + 1.0))
    assert rel_err < 2e-2, f"bf16 path mismatch: max rel err {rel_err}"

    print("KERNEL_OK")
</pallas_src>

<mosaic_0001>
module attributes {stable_mosaic.version = 11 : i64} {
  func.func @_dcn_kernel(%arg0: i32, %arg1: memref<16x128xf32, #tpu.memory_space<vmem>>, %arg2: memref<3x128x128xf32, #tpu.memory_space<vmem>>, %arg3: memref<3x1x128xf32, #tpu.memory_space<vmem>>, %arg4: memref<16x128xf32, #tpu.memory_space<vmem>>) attributes {dimension_semantics = [#tpu.dimension_semantics<parallel>], iteration_bounds = array<i64: 2>, scalar_prefetch = 0 : i64, scratch_operands = 0 : i64, tpu.core_type = #tpu.core_type<tc>, window_params = [{transform_indices = @transform_0, window_bounds = array<i64: 16, 128>}, {pipeline_mode = #tpu.pipeline_mode<synchronous>, transform_indices = @transform_1, window_bounds = array<i64: 3, 128, 128>}, {pipeline_mode = #tpu.pipeline_mode<synchronous>, transform_indices = @transform_2, window_bounds = array<i64: 3, 1, 128>}, {transform_indices = @transform_3, window_bounds = array<i64: 16, 128>}]} {
    %c0 = arith.constant 0 : index
    %c0_0 = arith.constant 0 : index
    %0 = vector.load %arg1[%c0, %c0_0] : memref<16x128xf32, #tpu.memory_space<vmem>>, vector<16x128xf32>
    %c0_1 = arith.constant 0 : index
    %c0_2 = arith.constant 0 : index
    %c0_3 = arith.constant 0 : index
    %1 = vector.load %arg2[%c0_1, %c0_2, %c0_3] : memref<3x128x128xf32, #tpu.memory_space<vmem>>, vector<1x128x128xf32>
    %2 = vector.shape_cast %1 : vector<1x128x128xf32> to vector<128x128xf32>
    %cst = arith.constant dense<0.000000e+00> : vector<16x128xf32>
    %3 = tpu.matmul %0, %2, %cst {dimension_numbers = #tpu.dot_dimension_numbers<[1], [0], [0], [1], [0, 0, 1, 1], [], []>} : vector<16x128xf32>, vector<128x128xf32>, vector<16x128xf32> -> vector<16x128xf32>
    %c0_4 = arith.constant 0 : index
    %c0_5 = arith.constant 0 : index
    %c0_6 = arith.constant 0 : index
    %4 = vector.load %arg3[%c0_4, %c0_5, %c0_6] : memref<3x1x128xf32, #tpu.memory_space<vmem>>, vector<1x1x128xf32>
    %5 = vector.shape_cast %4 : vector<1x1x128xf32> to vector<1x128xf32>
    %6 = vector.broadcast %5 : vector<1x128xf32> to vector<16x128xf32>
    %7 = arith.addf %3, %6 : vector<16x128xf32>
    %8 = arith.mulf %0, %7 : vector<16x128xf32>
    %9 = arith.addf %8, %0 : vector<16x128xf32>
    %c1 = arith.constant 1 : index
    %c0_7 = arith.constant 0 : index
    %c0_8 = arith.constant 0 : index
    %10 = vector.load %arg2[%c1, %c0_7, %c0_8] : memref<3x128x128xf32, #tpu.memory_space<vmem>>, vector<1x128x128xf32>
    %11 = vector.shape_cast %10 : vector<1x128x128xf32> to vector<128x128xf32>
    %cst_9 = arith.constant dense<0.000000e+00> : vector<16x128xf32>
    %12 = tpu.matmul %9, %11, %cst_9 {dimension_numbers = #tpu.dot_dimension_numbers<[1], [0], [0], [1], [0, 0, 1, 1], [], []>} : vector<16x128xf32>, vector<128x128xf32>, vector<16x128xf32> -> vector<16x128xf32>
    %c1_10 = arith.constant 1 : index
    %c0_11 = arith.constant 0 : index
    %c0_12 = arith.constant 0 : index
    %13 = vector.load %arg3[%c1_10, %c0_11, %c0_12] : memref<3x1x128xf32, #tpu.memory_space<vmem>>, vector<1x1x128xf32>
    %14 = vector.shape_cast %13 : vector<1x1x128xf32> to vector<1x128xf32>
    %15 = vector.broadcast %14 : vector<1x128xf32> to vector<16x128xf32>
    %16 = arith.addf %12, %15 : vector<16x128xf32>
    %17 = arith.mulf %0, %16 : vector<16x128xf32>
    %18 = arith.addf %17, %9 : vector<16x128xf32>
    %c2 = arith.constant 2 : index
    %c0_13 = arith.constant 0 : index
    %c0_14 = arith.constant 0 : index
    %19 = vector.load %arg2[%c2, %c0_13, %c0_14] : memref<3x128x128xf32, #tpu.memory_space<vmem>>, vector<1x128x128xf32>
    %20 = vector.shape_cast %19 : vector<1x128x128xf32> to vector<128x128xf32>
    %cst_15 = arith.constant dense<0.000000e+00> : vector<16x128xf32>
    %21 = tpu.matmul %18, %20, %cst_15 {dimension_numbers = #tpu.dot_dimension_numbers<[1], [0], [0], [1], [0, 0, 1, 1], [], []>} : vector<16x128xf32>, vector<128x128xf32>, vector<16x128xf32> -> vector<16x128xf32>
    %c2_16 = arith.constant 2 : index
    %c0_17 = arith.constant 0 : index
    %c0_18 = arith.constant 0 : index
    %22 = vector.load %arg3[%c2_16, %c0_17, %c0_18] : memref<3x1x128xf32, #tpu.memory_space<vmem>>, vector<1x1x128xf32>
    %23 = vector.shape_cast %22 : vector<1x1x128xf32> to vector<1x128xf32>
    %24 = vector.broadcast %23 : vector<1x128xf32> to vector<16x128xf32>
    %25 = arith.addf %21, %24 : vector<16x128xf32>
    %26 = arith.mulf %0, %25 : vector<16x128xf32>
    %27 = arith.addf %26, %18 : vector<16x128xf32>
    %c0_19 = arith.constant 0 : index
    %c0_20 = arith.constant 0 : index
    %28 = vector.load %arg4[%c0_19, %c0_20] : memref<16x128xf32, #tpu.memory_space<vmem>>, vector<16x128xf32>
    tpu.vector_store %arg4[%c0_19, %c0_20], %27 {strides = array<i32>} : memref<16x128xf32, #tpu.memory_space<vmem>>, vector<16x128xf32>,
    return
  }
  func.func @transform_0(%arg0: i32) -> (i32, i32) {
    %c0_i32 = arith.constant 0 : i32
    %c0_i32_0 = arith.constant 0 : i32
    return %arg0, %c0_i32 : i32, i32
  }
  func.func @transform_1(%arg0: i32) -> (i32, i32, i32) {
    %c0_i32 = arith.constant 0 : i32
    %c0_i32_0 = arith.constant 0 : i32
    %c0_i32_1 = arith.constant 0 : i32
    %c0_i32_2 = arith.constant 0 : i32
    return %c0_i32, %c0_i32_0, %c0_i32_1 : i32, i32, i32
  }
  func.func @transform_2(%arg0: i32) -> (i32, i32, i32) {
    %c0_i32 = arith.constant 0 : i32
    %c0_i32_0 = arith.constant 0 : i32
    %c0_i32_1 = arith.constant 0 : i32
    %c0_i32_2 = arith.constant 0 : i32
    return %c0_i32, %c0_i32_0, %c0_i32_1 : i32, i32, i32
  }
  func.func @transform_3(%arg0: i32) -> (i32, i32) {
    %c0_i32 = arith.constant 0 : i32
    %c0_i32_0 = arith.constant 0 : i32
    return %arg0, %c0_i32 : i32, i32
  }
}

</mosaic_0001>

<bundles_post_ra>
// kernel: dcn_v2_cross_network.1
= control target key start
LH: loop header
LB: loop body
LE: loop exit
PB: predicated region body
PF: predicated region fallthrough
CT: control target
= control target key end

     0   :  { %8 = vsyncpa [#allocation3], 0  ;;  %s1268_s0 = inlined_call_operand.vmem [shape: f32[32,128], index: 0, kind: input, shape index: {}]   ;;  %s1269_s1 = inlined_call_operand.vmem [shape: f32[3,128,128], index: 1, kind: input, shape index: {}]   ;;  %s1270_s2 = inlined_call_operand.vmem [shape: f32[3,1,128], index: 2, kind: input, shape index: {}]   ;;  %s1271_s3 = inlined_call_operand.hbm [shape: f32[32,128], index: 3, kind: output, shape index: {}]  }
   0x1   :  { %10 = vsyncpa [#allocation3 + $0x1], 0  ;;  %s995_s12 = smov 0   ;;  %s997_s13 = smov 0  }
   0x2   :  { %s999_s14 = smov 0   ;;  %s1001_s15 = smov 0  }
   0x3 LB: > { %s1016_s16 = sadd.s32 4294967295, %s970_s15   ;;  %s562_s17 = sadd.s32 4294967294, %s970_s15   ;;  %s970_s15 = sphi %s1001_s15, %s1277_s15   ;;  %s966_s14 = sphi %s999_s14, %s1276_s14   ;;  %s962_s13 = sphi %s997_s13, %s1275_s13   ;;  %s958_s12 = sphi %s995_s12, %s1274_s12  }
   0x4   : > { %s1020_s18 = sadd.s32 1, %s970_s15   ;;  %s91_s19 = sadd.s32 1, %s966_s14 }
   0x5   : > { %s88_s20 = ssub.s32 %s970_s15, %s1020_s18  ;;  %p101_p0 = scmp.ne.s32.totalorder %s966_s14, %s962_s13 }
   0x6   : > { %p89_p1 = scmp.eq.s32.totalorder %s88_s20, 0  ;;  %p102_p2 = scmp.eq.s32.totalorder %s1016_s16, 1 }
   0x7   : > { %p107_p3 = scmp.ne.s32.totalorder %s962_s13, %s958_s12  ;;  %p108_p4 = scmp.eq.s32.totalorder %s562_s17, 1 }
   0x8   : > { %s1031_s21 = scalar_select %p89_p1, %s966_s14, %s91_s19  }
   0x9   : > { %p1033_p5 = por %p102_p2, %p101_p0  ;;  %p1037_p6 = por %p108_p4, %p107_p3 }
   0xa   : > { %p565_p7 = scmp.ge.s32.totalorder %s970_s15, 1  ;;  %p141_p8 = scmp.lt.s32.totalorder %s970_s15, 3 }
   0xc   : > { %p142_p9 = pnand %p565_p7, %p141_p8 }
   0xd   : > { %v174_v0 = vld [vmem:[%s1269_s1] sm:$0xff] (!%p142_p9)  ;;  %v175_v1 = vld [vmem:[%s1269_s1 + $0x8] sm:$0xff] (!%p142_p9)  ;;  %v176_v2 = vld [vmem:[%s1269_s1 + $0x10] sm:$0xff] (!%p142_p9)  ;;  %s567_s30 = sshll.u32 (!%p142_p9), %s1016_s16, 1  ;;  %s162_s19 = sand.u32 (!%p142_p9), 1, %s962_s13  }
   0xe   : > { %145 = sbr.rel (%p142_p9) target bundleno = 722 (0x2d2), region = 32  ;;  %v771_v3 = vpack.c.bf16 (!%p142_p9), %v175_v1, %v174_v0  ;;  %v177_v4 = vld [vmem:[%s1269_s1 + $0x18] sm:$0xff] (!%p142_p9)  ;;  %p166_p10 = scmp.lt.s32.totalorder (!%p142_p9), %s567_s30, 3  ;;  %v178_v6 = vld [vmem:[%s1269_s1 + $0x20] sm:$0xff] (!%p142_p9)  ;;  %v179_v7 = vld [vmem:[%s1269_s1 + $0x28] sm:$0xff] (!%p142_p9) }
   0xf   : > { %v775_v5 = vpack.c.bf16 (!%p142_p9), %v177_v4, %v176_v2  ;;  %v779_v8 = vpack.c.bf16 (!%p142_p9), %v179_v7, %v178_v6  ;;  %v180_v9 = vld [vmem:[%s1269_s1 + $0x30] sm:$0xff] (!%p142_p9)  ;;  %v570_v10 = vld [vmem:[%s1269_s1 + $0x80] sm:$0xff] (!%p142_p9)  ;;  %v571_v11 = vld [vmem:[%s1269_s1 + $0x88] sm:$0xff] (!%p142_p9)  ;;  %s566_s20 = sshll.u32 (!%p142_p9), %s162_s19, 4  ;;  %s611_s28 = sshll.u32 (!%p142_p9), %s1016_s16, 8 }
  0x10   : > { %772 = vmatprep.subr.bf16.mxu0 (!%p142_p9), %v771_v3  ;;  %v181_v12 = vld [vmem:[%s1269_s1 + $0x38] sm:$0xff] (!%p142_p9)  ;;  %v803_v13 = vpack.c.bf16 (!%p142_p9), %v571_v11, %v570_v10  ;;  %v572_v14 = vld [vmem:[%s1269_s1 + $0x90] sm:$0xff] (!%p142_p9)  ;;  %v574_v18 = vld [vmem:[%s1269_s1 + $0xa0] sm:$0xff] (!%p142_p9)  ;;  %s164_s26 = scalar_lea.vmem (!%p142_p9), [#allocation2], %s566_s20  ;;  %s1225_s5 = scalar_lea.hbm (!%p142_p9), %s1271_s3, %s611_s28 }
  0x11   : > { %774 = vmatpush3.bf16.msra.mxu0 (!%p142_p9), %v771_v3  ;;  %v573_v15 = vld [vmem:[%s1269_s1 + $0x98] sm:$0xff] (!%p142_p9)  ;;  %v575_v19 = vld [vmem:[%s1269_s1 + $0xa8] sm:$0xff] (!%p142_p9)  ;;  %v783_v20 = vpack.c.bf16 (!%p142_p9), %v181_v12, %v180_v9  ;;  %v182_v21 = vld [vmem:[%s1269_s1 + $0x40] sm:$0xff] (!%p142_p9)  ;;  %s500_s27 = sshll.u32 (!%p142_p9), %s164_s26, 4  ;;  %s1227_s6 = scalar_lea.sflag (!%p142_p9), [#allocation3], %s162_s19  ;;  %s1220_s27 = int_to_ptr.vmem [resolvable:$true] %s500_s27 }
  0x12   : > { %776 = vmatprep.subr.bf16.mxu0 (!%p142_p9), %v775_v5  ;;  %v807_v17 = vpack.c.bf16 (!%p142_p9), %v573_v15, %v572_v14  ;;  %804 = vmatprep.subr.bf16.mxu1 (!%p142_p9), %v803_v13  ;;  %v183_v22 = vld [vmem:[%s1269_s1 + $0x48] sm:$0xff] (!%p142_p9)  ;;  %v811_v23 = vpack.c.bf16 (!%p142_p9), %v575_v19, %v574_v18  ;;  %v576_v24 = vld [vmem:[%s1269_s1 + $0xb0] sm:$0xff] (!%p142_p9)  ;;  %v577_v25 = vld [vmem:[%s1269_s1 + $0xb8] sm:$0xff] (!%p142_p9)  ;;  %s908_s16 = scalar_lea.vmem (!%p142_p9), %s1220_s27, 256  ;;  %s972_s7 = smov (!%p142_p9), [#allocation2]  }
  0x13   : > { %806 = vmatpush3.bf16.msra.mxu1 (!%p142_p9), %v803_v13  ;;  %v787_v26 = vpack.c.bf16 (!%p142_p9), %v183_v22, %v182_v21  ;;  %v184_v27 = vld [vmem:[%s1269_s1 + $0x50] sm:$0xff] (!%p142_p9)  ;;  %v185_v28 = vld [vmem:[%s1269_s1 + $0x58] sm:$0xff] (!%p142_p9)  ;;  %v815_v29 = vpack.c.bf16 (!%p142_p9), %v577_v25, %v576_v24  ;;  %v578_v30 = vld [vmem:[%s1269_s1 + $0xc0] sm:$0xff] (!%p142_p9)  ;;  %p909_p11 = scmp.ne.s32.totalorder (!%p142_p9), %s1220_s27, %s908_s16  ;;  %s912_s8 = sshll.u32 (!%p142_p9), %s972_s7, 4  ;;  %s913_s8 = int_to_ptr.vmem [resolvable:$false] %s912_s8 }
  0x14   : > { %808 = vmatprep.subr.bf16.mxu1 (!%p142_p9), %v807_v17  ;;  %v579_v31 = vld [vmem:[%s1269_s1 + $0xc8] sm:$0xff] (!%p142_p9)  ;;  %v791_v32 = vpack.c.bf16 (!%p142_p9), %v185_v28, %v184_v27  ;;  %v186_v33 = vld [vmem:[%s1269_s1 + $0x60] sm:$0xff] (!%p142_p9)  ;;  %v580_v36 = vld [vmem:[%s1269_s1 + $0xd0] sm:$0xff] (!%p142_p9)  ;;  %s914_s9 = scalar_lea.vmem (!%p142_p9), %s913_s8, 512  ;;  %p915_p0 = scmp.lt.s32.totalorder (!%p142_p9), %s1220_s27, %s913_s8 }
  0x15   : > { %s1279_s30 = smov (!%p166_p10, %s567_s30), 3  ;;  %778 = vmatpush3.bf16.msra.mxu0 %v775_v5  ;;  %v187_v34 = vld [vmem:[%s1269_s1 + $0x68] sm:$0xff]  ;;  %v819_v35 = vpack.c.bf16 %v579_v31, %v578_v30  ;;  %v581_v37 = vld [vmem:[%s1269_s1 + $0xd8] sm:$0xff]  ;;  %v188_v39 = vld [vmem:[%s1269_s1 + $0x70] sm:$0xff]  ;;  %p910_p12 = pnand %p909_p11, %p1033_p5 }
  0x16   : > { %s568_s17 = sshll.u32 %s1279_s30, 3  ;;  %780 = vmatprep.subr.bf16.mxu0 %v779_v8  ;;  %v795_v38 = vpack.c.bf16 %v187_v34, %v186_v33  ;;  %v189_v40 = vld [vmem:[%s1269_s1 + $0x78] sm:$0xff]  ;;  %v823_v41 = vpack.c.bf16 %v581_v37, %v580_v36  ;;  %v582_v44 = vld [vmem:[%s1269_s1 + $0xe0] sm:$0xff]  ;;  %v583_v45 = vld [vmem:[%s1269_s1 + $0xe8] sm:$0xff]  ;;  %p916_p1 = scmp.lt.s32.totalorder %s914_s9, %s908_s16 }
  0x17   : > { %s1077_s4 = scalar_lea.vmem %s1268_s0, %s568_s17  ;;  %810 = vmatpush3.bf16.msra.mxu1 %v807_v17  ;;  %v799_v42 = vpack.c.bf16 %v189_v40, %v188_v39  ;;  %v827_v46 = vpack.c.bf16 %v583_v45, %v582_v44  ;;  %v584_v47 = vld [vmem:[%s1269_s1 + $0xf0] sm:$0xff]  ;;  %v585_v48 = vld [vmem:[%s1269_s1 + $0xf8] sm:$0xff]  ;;  %v588_v50 = vld [vmem:[%s1269_s1 + $0x100] sm:$0xff]  ;;  %p911_p13 = pneg %p910_p12 }
  0x18   : > { %v1086_v16 = vld [vmem:[%s1077_s4] sm:$0xff]  ;;  %812 = vmatprep.subr.bf16.mxu1 %v811_v23  ;;  %v1138_v43 = vld [vmem:[%s1077_s4 + $0x8] sm:$0xff]  ;;  %v831_v49 = vpack.c.bf16 %v585_v48, %v584_v47  ;;  %v590_v52 = vld [vmem:[%s1269_s1 + $0x110] sm:$0xff]  ;;  %p917_p2 = por %p916_p1, %p915_p0 }
  0x19   : > { %698 = vmatprep.mubr.f32.mxu0 %v1086_v16  ;;  %782 = vmatpush3.bf16.msra.mxu0 %v779_v8  ;;  %v589_v51 = vld [vmem:[%s1269_s1 + $0x108] sm:$0xff]  ;;  %v591_v54 = vld [vmem:[%s1269_s1 + $0x118] sm:$0xff]  ;;  %v592_v56 = vld [vmem:[%s1269_s1 + $0x120] sm:$0xff] }
  0x1a   : > { %784 = vmatprep.subr.bf16.mxu0 %v783_v20  ;;  %v835_v53 = vpack.c.bf16 %v589_v51, %v588_v50  ;;  %v839_v55 = vpack.c.bf16 %v591_v54, %v590_v52  ;;  %v593_v57 = vld [vmem:[%s1269_s1 + $0x128] sm:$0xff]  ;;  %v594_v59 = vld [vmem:[%s1269_s1 + $0x130] sm:$0xff]  ;;  %v595_v60 = vld [vmem:[%s1269_s1 + $0x138] sm:$0xff]  ;;  %p918_p3 = pnand %p917_p2, %p911_p13 }
  0x1b   : > { %814 = vmatpush3.bf16.msra.mxu1 %v811_v23  ;;  %v843_v58 = vpack.c.bf16 %v593_v57, %v592_v56  ;;  %v847_v61 = vpack.c.bf16 %v595_v60, %v594_v59  ;;  %v596_v62 = vld [vmem:[%s1269_s1 + $0x140] sm:$0xff]  ;;  %v597_v63 = vld [vmem:[%s1269_s1 + $0x148] sm:$0xff]  ;;  %v598_v1 = vld [vmem:[%s1269_s1 + $0x150] sm:$0xff] }
  0x1c   : > { %816 = vmatprep.subr.bf16.mxu1 %v815_v29  ;;  %v851_v0 = vpack.c.bf16 %v597_v63, %v596_v62  ;;  %v599_v2 = vld [vmem:[%s1269_s1 + $0x158] sm:$0xff]  ;;  %v569_v4 = vld [vmem:[%s1270_s2] ss:$0 sm:$0xff]  ;;  %v601_v14 = vld [vmem:[%s1269_s1 + $0x168] sm:$0xff] }
  0x1d   : > { %786 = vmatpush3.bf16.msra.mxu0 %v783_v20  ;;  %v855_v3 = vpack.c.bf16 %v599_v2, %v598_v1  ;;  %v600_v13 = vld [vmem:[%s1269_s1 + $0x160] sm:$0xff]  ;;  %v602_v17 = vld [vmem:[%s1269_s1 + $0x170] sm:$0xff]  ;;  %v603_v18 = vld [vmem:[%s1269_s1 + $0x178] sm:$0xff] }
  0x1e   : > { %788 = vmatprep.subr.bf16.mxu0 %v787_v26  ;;  %v859_v15 = vpack.c.bf16 %v601_v14, %v600_v13  ;;  %v863_v19 = vpack.c.bf16 %v603_v18, %v602_v17  ;;  %v587_v20 = vld [vmem:[%s1270_s2 + $0x1] ss:$0 sm:$0xff] }
  0x1f   : > { %818 = vmatpush3.bf16.msra.mxu1 %v815_v29  ;;  %v605_v29 = vld [vmem:[%s1270_s2 + $0x2] ss:$0 sm:$0xff] }
  0x20   : > { %820 = vmatprep.subr.bf16.mxu1 %v819_v35 }
  0x21   : > { %790 = vmatpush3.bf16.msra.mxu0 %v787_v26 }
  0x22   : > { %792 = vmatprep.subr.bf16.mxu0 %v791_v32 }
  0x23   : > { %822 = vmatpush3.bf16.msra.mxu1 %v819_v35 }
  0x24   : > { %824 = vmatprep.subr.bf16.mxu1 %v823_v41 }
  0x25   : > { %794 = vmatpush3.bf16.msra.mxu0 %v791_v32 }
  0x26   : > { %796 = vmatprep.subr.bf16.mxu0 %v795_v38 }
  0x27   : > { %826 = vmatpush3.bf16.msra.mxu1 %v823_v41 }
  0x28   : > { %828 = vmatprep.subr.bf16.mxu1 %v827_v46 }
  0x29   : > { %798 = vmatpush3.bf16.msra.mxu0 %v795_v38 }
  0x2a   : > { %800 = vmatprep.subr.bf16.mxu0 %v799_v42 }
  0x2b   : > { %830 = vmatpush3.bf16.msra.mxu1 %v827_v46 }
  0x2c   : > { %832 = vmatprep.subr.bf16.mxu1 %v831_v49 }
  0x2d   : > { %802 = vmatpush3.bf16.msra.mxu0 %v799_v42 }
  0x2e   : > { %836 = vmatprep.subr.bf16.mxu0 %v835_v53 }
  0x2f   : > { %834 = vmatpush3.bf16.msra.mxu1 %v831_v49 }
  0x30   : > { %699 = vmatmul.mubr.f32.vlgmr.msra.gmra.mrb[0].mxu0 %v1138_v43 }
  0x31   : > { %838 = vmatpush3.bf16.msra.mxu0 %v835_v53 }
  0x32   : > { %840 = vmatprep.subr.bf16.mxu0 %v839_v55 }
  0x35   : > { %842 = vmatpush3.bf16.msra.mxu0 %v839_v55 }
  0x36   : > { %844 = vmatprep.subr.bf16.mxu0 %v843_v58 }
  0x39   : > { %846 = vmatpush3.bf16.msra.mxu0 %v843_v58 }
  0x3a   : > { %848 = vmatprep.subr.bf16.mxu0 %v847_v61 }
  0x3d   : > { %850 = vmatpush3.bf16.msra.mxu0 %v847_v61 }
  0x3e   : > { %852 = vmatprep.subr.bf16.mxu0 %v851_v0 }
  0x41   : > { %854 = vmatpush3.bf16.msra.mxu0 %v851_v0 }
  0x42   : > { %856 = vmatprep.subr.bf16.mxu0 %v855_v3 }
  0x45   : > { %858 = vmatpush3.bf16.msra.mxu0 %v855_v3 }
  0x46   : > { %860 = vmatprep.subr.bf16.mxu0 %v859_v15 }
  0x49   : > { %862 = vmatpush3.bf16.msra.mxu0 %v859_v15 }
  0x4a   : > { %864 = vmatprep.subr.bf16.mxu0 %v863_v19 }
  0x4d   : > { %866 = vmatpush3.bf16.msra.mxu0 %v863_v19 }
 0x103   : > { %v700_v5 = vpop.f32.mrb[0].mxu0 }
 0x104   : > { %v269_v6 = vadd.f32 %v700_v5, %v569_v4  ;;  %v263_v7 = vpop.f32.mrb[1].mxu0 }
 0x105   : > { %v264_v8 = vadd.f32 %v569_v4, %v263_v7 }
 0x106   : > { %v273_v9 = vmul.f32 %v269_v6, %v1138_v43 }
 0x107   : > { %v272_v10 = vmul.f32 %v264_v8, %v1086_v16 }
 0x108   : > { %v275_v12 = vadd.f32 %v273_v9, %v1138_v43 }
 0x109   : > { %v274_v11 = vadd.f32 %v272_v10, %v1086_v16 }
 0x10b   : > { %733 = vmatprep.mubr.f32.mxu1 %v274_v11 }
 0x10c   : > { %734 = vmatmul.mubr.f32.vlgmr.msra.gmra.mrb[0].mxu1 %v275_v12 }
 0x1df   : > { %v735_v21 = vpop.f32.mrb[0].mxu1 }
 0x1e0   : > { %v373_v22 = vadd.f32 %v735_v21, %v587_v20  ;;  %v367_v23 = vpop.f32.mrb[1].mxu1 }
 0x1e1   : > { %v368_v24 = vadd.f32 %v587_v20, %v367_v23 }
 0x1e2   : > { %v377_v25 = vmul.f32 %v373_v22, %v1138_v43 }
 0x1e3   : > { %v376_v26 = vmul.f32 %v368_v24, %v1086_v16 }
 0x1e4   : > { %v379_v28 = vadd.f32 %v377_v25, %v275_v12 }
 0x1e5   : > { %v378_v27 = vadd.f32 %v376_v26, %v274_v11 }
 0x1e7   : > { %768 = vmatprep.mubr.f32.mxu0 %v378_v27 }
 0x1e8   : > { %769 = vmatmul.mubr.f32.vlgmr.msra.gmra.mrb[2].mxu0 %v379_v28 }
 0x2bb   : > { %v770_v30 = vpop.f32.mrb[2].mxu0 }
 0x2bc   : > { %v477_v31 = vadd.f32 %v770_v30, %v605_v29  ;;  %v471_v32 = vpop.f32.mrb[3].mxu0 }
 0x2bd   : > { %v472_v33 = vadd.f32 %v605_v29, %v471_v32 }
 0x2be   : > { %v481_v34 = vmul.f32 %v477_v31, %v1138_v43 }
 0x2bf   : > { %v480_v35 = vmul.f32 %v472_v33, %v1086_v16 }
 0x2c0   : > { %v483_v36 = vadd.f32 %v481_v34, %v379_v28 }
 0x2c1   : > { %v482_v37 = vadd.f32 %v480_v35, %v378_v27 }
 0x2c2   : > { %485 = vst [vmem:[%s164_s26 + $0x8] sm:$0xff] %v483_v36 }
 0x2c3   : > { %484 = vst [vmem:[%s164_s26] sm:$0xff] %v482_v37 }
 0x2c4   : > { %921 = shalt.err (!%p918_p3)
}
 0x2c5   : > { %s922_s10 = scalar_lea.hbm %s1225_s5, 256  ;;  %s926_s4 = scalar_lea.hbm %s1271_s3, 512 }
 0x2c6   : > { %p923_p4 = scmp.ne.s32.totalorder %s1225_s5, %s922_s10  ;;  %p927_p9 = scmp.lt.u32.totalorder %s1225_s5, %s1271_s3 }
 0x2c7   : > { %p928_p10 = scmp.lt.u32.totalorder %s926_s4, %s922_s10  ;;  %p930_p12 = scmp.lt.u32.totalorder %s922_s10, %s1225_s5 }
 0x2c8   : > { %p924_p7 = pnand %p923_p4, %p1033_p5 }
 0x2c9   : > { %p929_p11 = por %p928_p10, %p927_p9 }
 0x2ca   : > { %p925_p8 = pneg %p924_p7 }
 0x2cb   : > { %p931_p13 = por %p930_p12, %p929_p11 }
 0x2cd   : > { %p932_p0 = pnand %p931_p13, %p925_p8 }
 0x2cf   : > { %935 = shalt.err (!%p932_p0)
}
 0x2d0   : > { %s973_s24 = smov 128   ;;  %s974_s25 = smov 8  }
 0x2d1   : > { %867 = dma.vmem_to_hbm [thread:$0]  (%p1033_p5), %s1220_s27, 256, %s1225_s5, %s1227_s6, %s973_s24, %s973_s24, %s974_s25  }
 0x2d2 PF: > { %p873_p1 = scmp.ge.s32.totalorder %s970_s15, 2  ;;  %s515_s26 = sand.u32 1, %s958_s12  }
 0x2d3   : > { %s516_s28 = scalar_lea.sflag [#allocation3], %s515_s26 }
 0x2d4   : > { %p870_p2 = pnand %p873_p1, %p1037_p6 }
 0x2d6   : > { %953 = dma.done.wait (!%p870_p2), %s516_s28, 256  }
 0x2d7   : > { %955 = vsyncadd (!%p870_p2), %s516_s28, 4294967040  ;;  %p13_p3 = scmp.ge.s32.totalorder %s1020_s18, 4   ;;  %s1274_s12 = smov %s962_s13 }
 0x2d8   : > { %s1275_s13 = smov %s966_s14  ;;  %s1276_s14 = smov %s1031_s21 }
 0x2d9   : > { %s1277_s15 = smov %s1020_s18  ;;  %15 = sbr.rel (!%p13_p3) target bundleno = 3 (0x3), region = 71 }
 0x2e0   :  { %521 = vsyncpa [#allocation3], 1 }
 0x2e1   :  { %523 = vsyncpa [#allocation3 + $0x1], 1 }

</bundles_post_ra>
